<compile_context>
chip_gen: v7x
topology: tpu7x:2x2x1
jax: 0.10.0
libtpu: 0.0.40
codegen_flags: <defaults>
</compile_context>

<pallas_src>
import functools

import jax
import jax.numpy as jnp
from jax.experimental import pallas as pl
from jax.experimental.pallas import tpu as pltpu


def _ff_kernel(x_ref, w_ref, b_ref, o_ref, *, h1, h2, n_out, n_pad):
    """One batch tile: x (TB, d_in) natural layout -> out (TB, n_out)."""
    f32 = jnp.float32
    r0, r1, r2 = h1, h1 + h2, h1 + h2 + n_pad

    x = x_ref[...]                                           # (TB, d_in)

    # Layer 1: relu(W1 @ x^T + b1), computed lane-dense as (h1, TB).
    # Contract over x's last dim so no transpose of x ever touches HBM.
    h = jax.lax.dot_general(w_ref[0:r0, :], x, (((1,), (1,)), ((), ())),
                            preferred_element_type=f32)      # (h1, TB)
    h = jnp.maximum(h + b_ref[0:r0, :], 0.0)                 # f32 intermediates

    # Layer 2: relu(W2 @ h + b2)
    h = jnp.dot(w_ref[r0:r1, 0:h1].astype(f32), h,
                preferred_element_type=f32)                  # (h2, TB)
    h = jnp.maximum(h + b_ref[r0:r1, :], 0.0)

    # Final layer (rows zero-padded to n_pad=8 for a clean 8-sublane transpose).
    out = jnp.dot(w_ref[r1:r2, 0:h2].astype(f32), h,
                  preferred_element_type=f32)                # (n_pad, TB)
    out = out + b_ref[r1:r2, :]
    o_ref[...] = out.T[:, 0:n_out].astype(o_ref.dtype)       # (TB, n_out)


def _pack_params(params, dtype):
    """Pack transposed weights into one resident block, all biases into another."""
    w1, b1 = params["w1"], params["b1"]
    w2, b2 = params["w2"], params["b2"]
    wf, bf = params["wf"], params["bf"]
    d_in, h1 = w1.shape
    h2 = w2.shape[1]
    n_out = wf.shape[1]
    n_pad = 8 * ((n_out + 7) // 8)          # pad final rows to a sublane multiple
    rows = h1 + h2 + n_pad

    w_pack = jnp.zeros((rows, d_in), jnp.float32)
    w_pack = w_pack.at[0:h1, 0:d_in].set(w1.T)
    w_pack = w_pack.at[h1:h1 + h2, 0:h1].set(w2.T)
    w_pack = w_pack.at[h1 + h2:h1 + h2 + n_out, 0:h2].set(wf.T)

    b_pack = jnp.zeros((rows, 1), jnp.float32)
    b_pack = b_pack.at[0:h1, 0].set(b1.reshape(-1))
    b_pack = b_pack.at[h1:h1 + h2, 0].set(b2.reshape(-1))
    b_pack = b_pack.at[h1 + h2:h1 + h2 + n_out, 0].set(bf.reshape(-1))

    return w_pack.astype(dtype), b_pack, h1, h2, n_out, n_pad


def ff_semantic_classifier(x, params, *, tb=16384):
    """x: (B, d_in).  params: dict of (in, out)-layout weights / (1, out) biases.

    Weights/activations compute in x.dtype (keep x f32 unless it already arrives
    bf16 from its producer); accumulation and intermediates are always f32.
    """
    B, d_in = x.shape
    assert d_in == params["w1"].shape[0], "feature-size mismatch between x and params"
    w_pack, b_pack, h1, h2, n_out, n_pad = _pack_params(params, x.dtype)

    # Batch tile: multiple of 128, no bigger than the (128-padded) batch.
    tb = max(128, 128 * (int(tb) // 128))
    b_ceil = 128 * int(pl.cdiv(B, 128))
    tb = min(tb, b_ceil)
    # v7x megacore: once tiles would still be >=4K rows, keep >=4 of them so both
    # TensorCores get work and each core's pipeline stays full.
    if b_ceil >= 4 * 4096:
        tb = min(tb, 128 * int(pl.cdiv(int(pl.cdiv(B, 4)), 128)))
    n_tiles = int(pl.cdiv(B, tb))   # ragged last tile: OOB reads padded, OOB writes dropped

    grid_spec = pl.GridSpec(
        grid=(n_tiles,),
        in_specs=[
            pl.BlockSpec((tb, d_in), lambda i: (i, 0)),       # streamed x tiles
            pl.BlockSpec(w_pack.shape, lambda i: (0, 0)),     # resident weights
            pl.BlockSpec(b_pack.shape, lambda i: (0, 0)),     # resident biases
        ],
        out_specs=pl.BlockSpec((tb, n_out), lambda i: (i, 0)),
    )

    itemsize = jnp.dtype(x.dtype).itemsize
    cost = pl.CostEstimate(
        flops=2 * B * (d_in * h1 + h1 * h2 + h2 * n_out),
        transcendentals=0,
        bytes_accessed=B * d_in * itemsize + B * n_out * 4
        + int(w_pack.size) * itemsize + int(b_pack.size) * 4,
    )

    return pl.pallas_call(
        functools.partial(_ff_kernel, h1=h1, h2=h2, n_out=n_out, n_pad=n_pad),
        out_shape=jax.ShapeDtypeStruct((B, n_out), jnp.float32),
        grid_spec=grid_spec,
        compiler_params=pltpu.CompilerParams(
            dimension_semantics=("parallel",)),
        cost_estimate=cost,
    )(x, w_pack, b_pack)


def _init_linear(key, fan_in, fan_out):
    # Deterministic init mimicking PyTorch default (uniform +/- 1/sqrt(fan_in)).
    kw, kb = jax.random.split(key)
    bound = 1.0 / jnp.sqrt(jnp.float32(fan_in))
    w = jax.random.uniform(kw, (fan_in, fan_out), jnp.float32, -bound, bound)
    b = jax.random.uniform(kb, (1, fan_out), jnp.float32, -bound, bound)
    return w, b


def make_params(key, d_in=32, n_rooms=4):
    k1, k2, k3 = jax.random.split(key, 3)
    # Replicates __init__ size schedule: 32->16, 16->8, final 8->n_rooms.
    w1, b1 = _init_linear(k1, d_in, d_in // 2)
    w2, b2 = _init_linear(k2, d_in // 2, d_in // 4)
    wf, bf = _init_linear(k3, d_in // 4, n_rooms)
    return {"w1": w1, "b1": b1, "w2": w2, "b2": b2, "wf": wf, "bf": bf}


def reference(x, p):
    hp = jax.lax.Precision.HIGHEST
    h = jnp.maximum(jnp.dot(x, p["w1"], precision=hp) + p["b1"], 0.0)
    h = jnp.maximum(jnp.dot(h, p["w2"], precision=hp) + p["b2"], 0.0)
    return jnp.dot(h, p["wf"], precision=hp) + p["bf"]


if __name__ == "__main__":
    key = jax.random.PRNGKey(0)
    kx, kp, kx2 = jax.random.split(key, 3)

    d_in, n_rooms = 32, 4
    params = make_params(kp, d_in=d_in, n_rooms=n_rooms)

    # 1) Small shape consistent with the module (batch=2, img_feature_size=32).
    x_small = jax.random.normal(kx, (2, d_in), jnp.float32)
    out_small = jax.block_until_ready(ff_semantic_classifier(x_small, params))
    ref_small = reference(x_small, params)
    assert out_small.shape == (2, n_rooms)
    assert jnp.allclose(out_small, ref_small, atol=1e-4, rtol=1e-4), \
        "small-batch mismatch vs reference"

    # 2) Larger batch: exercises the batch grid (3 tiles) + ragged last tile.
    x_big = jax.random.normal(kx2, (2500, d_in), jnp.float32)
    out_big = jax.block_until_ready(
        ff_semantic_classifier(x_big, params, tb=1024))
    ref_big = reference(x_big, params)
    assert out_big.shape == (2500, n_rooms)
    assert jnp.allclose(out_big, ref_big, atol=1e-4, rtol=1e-4), \
        "tiled/ragged-batch mismatch vs reference"

    print("KERNEL_OK")
</pallas_src>

<mosaic_0001>
module attributes {stable_mosaic.version = 11 : i64} {
  func.func @_ff_kernel(%arg0: i32, %arg1: memref<128x32xf32, #tpu.memory_space<vmem>>, %arg2: memref<32x32xf32, #tpu.memory_space<vmem>>, %arg3: memref<32x1xf32, #tpu.memory_space<vmem>>, %arg4: memref<128x4xf32, #tpu.memory_space<vmem>>) attributes {dimension_semantics = [#tpu.dimension_semantics<parallel>], iteration_bounds = array<i64: 1>, scalar_prefetch = 0 : i64, scratch_operands = 0 : i64, tpu.core_type = #tpu.core_type<tc>, window_params = [{transform_indices = @transform_0, window_bounds = array<i64: 128, 32>}, {pipeline_mode = #tpu.pipeline_mode<synchronous>, transform_indices = @transform_1, window_bounds = array<i64: 32, 32>}, {pipeline_mode = #tpu.pipeline_mode<synchronous>, transform_indices = @transform_2, window_bounds = array<i64: 32, 1>}, {transform_indices = @transform_3, window_bounds = array<i64: 128, 4>}]} {
    %c0 = arith.constant 0 : index
    %c0_0 = arith.constant 0 : index
    %0 = vector.load %arg1[%c0, %c0_0] : memref<128x32xf32, #tpu.memory_space<vmem>>, vector<128x32xf32>
    %c0_1 = arith.constant 0 : index
    %c0_2 = arith.constant 0 : index
    %1 = vector.load %arg2[%c0_1, %c0_2] : memref<32x32xf32, #tpu.memory_space<vmem>>, vector<16x32xf32>
    %cst = arith.constant dense<0.000000e+00> : vector<16x128xf32>
    %2 = tpu.matmul %1, %0, %cst {dimension_numbers = #tpu.dot_dimension_numbers<[1], [1], [0], [0], [0, 0, 1, 0], [], []>} : vector<16x32xf32>, vector<128x32xf32>, vector<16x128xf32> -> vector<16x128xf32>
    %c0_3 = arith.constant 0 : index
    %c0_4 = arith.constant 0 : index
    %3 = vector.load %arg3[%c0_3, %c0_4] : memref<32x1xf32, #tpu.memory_space<vmem>>, vector<16x1xf32>
    %4 = vector.broadcast %3 : vector<16x1xf32> to vector<16x128xf32>
    %5 = arith.addf %2, %4 : vector<16x128xf32>
    %cst_5 = arith.constant 0.000000e+00 : f32
    %6 = vector.broadcast %cst_5 : f32 to vector<16x128xf32>
    %7 = arith.maximumf %5, %6 : vector<16x128xf32>
    %c16 = arith.constant 16 : index
    %c0_6 = arith.constant 0 : index
    %8 = vector.load %arg2[%c16, %c0_6] : memref<32x32xf32, #tpu.memory_space<vmem>>, vector<8x16xf32>
    %cst_7 = arith.constant dense<0.000000e+00> : vector<8x128xf32>
    %9 = tpu.matmul %8, %7, %cst_7 {dimension_numbers = #tpu.dot_dimension_numbers<[1], [0], [0], [1], [0, 0, 1, 1], [], []>} : vector<8x16xf32>, vector<16x128xf32>, vector<8x128xf32> -> vector<8x128xf32>
    %c16_8 = arith.constant 16 : index
    %c0_9 = arith.constant 0 : index
    %10 = vector.load %arg3[%c16_8, %c0_9] : memref<32x1xf32, #tpu.memory_space<vmem>>, vector<8x1xf32>
    %11 = vector.broadcast %10 : vector<8x1xf32> to vector<8x128xf32>
    %12 = arith.addf %9, %11 : vector<8x128xf32>
    %cst_10 = arith.constant 0.000000e+00 : f32
    %13 = vector.broadcast %cst_10 : f32 to vector<8x128xf32>
    %14 = arith.maximumf %12, %13 : vector<8x128xf32>
    %c24 = arith.constant 24 : index
    %c0_11 = arith.constant 0 : index
    %15 = vector.load %arg2[%c24, %c0_11] : memref<32x32xf32, #tpu.memory_space<vmem>>, vector<8x8xf32>
    %cst_12 = arith.constant dense<0.000000e+00> : vector<8x128xf32>
    %16 = tpu.matmul %15, %14, %cst_12 {dimension_numbers = #tpu.dot_dimension_numbers<[1], [0], [0], [1], [0, 0, 1, 1], [], []>} : vector<8x8xf32>, vector<8x128xf32>, vector<8x128xf32> -> vector<8x128xf32>
    %c24_13 = arith.constant 24 : index
    %c0_14 = arith.constant 0 : index
    %17 = vector.load %arg3[%c24_13, %c0_14] : memref<32x1xf32, #tpu.memory_space<vmem>>, vector<8x1xf32>
    %18 = vector.broadcast %17 : vector<8x1xf32> to vector<8x128xf32>
    %19 = arith.addf %16, %18 : vector<8x128xf32>
    %20 = tpu.transpose %19, [1, 0] : vector<8x128xf32> -> vector<128x8xf32>
    %21 = vector.extract_strided_slice %20 {offsets = [0, 0], sizes = [128, 4], strides = [1, 1]} : vector<128x8xf32> to vector<128x4xf32>
    %c0_15 = arith.constant 0 : index
    %c0_16 = arith.constant 0 : index
    %22 = vector.load %arg4[%c0_15, %c0_16] : memref<128x4xf32, #tpu.memory_space<vmem>>, vector<128x4xf32>
    tpu.vector_store %arg4[%c0_15, %c0_16], %21 {strides = array<i32>} : memref<128x4xf32, #tpu.memory_space<vmem>>, vector<128x4xf32>,
    return
  }
  func.func @transform_0(%arg0: i32) -> (i32, i32) {
    %c0_i32 = arith.constant 0 : i32
    %c0_i32_0 = arith.constant 0 : i32
    return %arg0, %c0_i32 : i32, i32
  }
  func.func @transform_1(%arg0: i32) -> (i32, i32) {
    %c0_i32 = arith.constant 0 : i32
    %c0_i32_0 = arith.constant 0 : i32
    %c0_i32_1 = arith.constant 0 : i32
    return %c0_i32, %c0_i32_0 : i32, i32
  }
  func.func @transform_2(%arg0: i32) -> (i32, i32) {
    %c0_i32 = arith.constant 0 : i32
    %c0_i32_0 = arith.constant 0 : i32
    %c0_i32_1 = arith.constant 0 : i32
    return %c0_i32, %c0_i32_0 : i32, i32
  }
  func.func @transform_3(%arg0: i32) -> (i32, i32) {
    %c0_i32 = arith.constant 0 : i32
    %c0_i32_0 = arith.constant 0 : i32
    return %arg0, %c0_i32 : i32, i32
  }
}

</mosaic_0001>

<bundles_post_ra>
// kernel: tpu_custom_call.1
= control target key start
LH: loop header
LB: loop body
LE: loop exit
PB: predicated region body
PF: predicated region fallthrough
CT: control target
= control target key end

     0   :  { %8 = vsyncpa [#allocation3], 0  ;;  %vm45_vm0 = vcmask 261120   ;;  %v579_v6 = vmov 0   ;;  %v580_v30 = vmov 0.0|0.0   ;;  %vm581_vm2 = vmmov 0   ;;  %s748_s0 = inlined_call_operand.vmem [shape: f32[2,32], index: 0, kind: input, shape index: {}]   ;;  %s749_s1 = inlined_call_operand.vmem [shape: f32[32,32], index: 1, kind: input, shape index: {}]   ;;  %s750_s2 = inlined_call_operand.vmem [shape: f32[32,1], index: 2, kind: input, shape index: {}]   ;;  %s751_s3 = inlined_call_operand.hbm [shape: f32[2,4], index: 3, kind: output, shape index: {}]  }
   0x1   :  { %v15_v0 = vld [vmem:[%s748_s0] sm:$0xff]  ;;  %v16_v1 = vld [vmem:[%s748_s0 + $0x8] sm:$0xff]  ;;  %vm614_vm1 = vmpackc.low %vm45_vm0, %vm45_vm0  ;;  %553 = vset.pattern.permute.xlu0 %v579_v6  ;;  %554 = vset.pattern.permute.xlu1 %v579_v6  ;;  %v582_v31 = vmov 0.0   ;;  %vm184_vm3 = vcmask 130048   ;;  %vm266_vm4 = vcmask 64512   ;;  %vm372_vm5 = vcmask 31744  }
   0x2   :  { %v495_v2 = vpack.c.bf16 %v16_v1, %v15_v0  ;;  %v17_v4 = vld [vmem:[%s748_s0 + $0x10] sm:$0xff]  ;;  %v18_v5 = vld [vmem:[%s748_s0 + $0x18] sm:$0xff]  ;;  %v19_v8 = vld [vmem:[%s748_s0 + $0x20] sm:$0xff]  ;;  %543 = vmatprep.subr.bf16.mxu1 %v580_v30  ;;  %487 = vmatprep.mubr.msk.f32.mxu1 %vm581_vm2, %v582_v31 }
   0x3   :  { %v501_v7 = vpack.c.bf16 %v18_v5, %v17_v4  ;;  %v20_v9 = vld [vmem:[%s748_s0 + $0x28] sm:$0xff]  ;;  %v31_v10 = vld [vmem:[%s749_s1] sm:$0xff]  ;;  %v21_v14 = vld [vmem:[%s748_s0 + $0x30] sm:$0xff] }
   0x4   :  { %497 = vmatprep.subr.msk.bf16.mxu0 %vm614_vm1, %v495_v2  ;;  %v33_v11 = vld [vmem:[%s750_s2] sm:$0xff]  ;;  %480 = vmatprep.mubr.msk.f32.mxu0 %vm45_vm0, %v31_v10  ;;  %v34_v12 = vld [vmem:[%s750_s2 + $0x8] sm:$0xff]  ;;  %v507_v13 = vpack.c.bf16 %v20_v9, %v19_v8  ;;  %v22_v15 = vld [vmem:[%s748_s0 + $0x38] sm:$0xff] }
   0x5   :  { %500 = vmatpush3.bf16.xpose.msk.msra.mxu0 %vm614_vm1, %v495_v2  ;;  %37 = vperm.xlu0 %553, %v33_v11   ;;  %v513_v16 = vpack.c.bf16 %v22_v15, %v21_v14  ;;  %v23_v17 = vld [vmem:[%s748_s0 + $0x40] sm:$0xff]  ;;  %v24_v18 = vld [vmem:[%s748_s0 + $0x48] sm:$0xff]  ;;  %v25_v20 = vld [vmem:[%s748_s0 + $0x50] sm:$0xff] }
   0x6   :  { %503 = vmatprep.subr.msk.bf16.mxu0 %vm614_vm1, %v501_v7  ;;  %v519_v19 = vpack.c.bf16 %v24_v18, %v23_v17  ;;  %v26_v21 = vld [vmem:[%s748_s0 + $0x58] sm:$0xff]  ;;  %v27_v23 = vld [vmem:[%s748_s0 + $0x60] sm:$0xff]  ;;  %v28_v24 = vld [vmem:[%s748_s0 + $0x68] sm:$0xff] }
   0x7   :  { %v525_v22 = vpack.c.bf16 %v26_v21, %v25_v20  ;;  %v531_v25 = vpack.c.bf16 %v28_v24, %v27_v23  ;;  %v29_v26 = vld [vmem:[%s748_s0 + $0x70] sm:$0xff]  ;;  %v30_v27 = vld [vmem:[%s748_s0 + $0x78] sm:$0xff]  ;;  %v32_v29 = vld [vmem:[%s749_s1 + $0x8] sm:$0xff] }
   0x8   :  { %v537_v28 = vpack.c.bf16 %v30_v27, %v29_v26  ;;  %v178_v32 = vld [vmem:[%s750_s2 + $0x10] sm:$0xff]  ;;  %v260_v33 = vld [vmem:[%s750_s2 + $0x18] sm:$0xff] }
   0x9   :  { %42 = vperm.xlu0 %553, %v34_v12   ;;  %181 = vperm.xlu1 %554, %v178_v32   ;;  %v177_v43 = vld [vmem:[%s749_s1 + $0x10] sm:$0xff]  ;;  %v259_v49 = vld [vmem:[%s749_s1 + $0x18] sm:$0xff] }
   0xd   :  { %506 = vmatpush3.bf16.xpose.msk.msra.mxu0 %vm614_vm1, %v501_v7  ;;  %263 = vperm.xlu1 %554, %v260_v33  }
   0xe   :  { %509 = vmatprep.subr.msk.bf16.mxu0 %vm614_vm1, %v507_v13 }
  0x15   :  { %512 = vmatpush3.bf16.xpose.msk.msra.mxu0 %vm614_vm1, %v507_v13 }
  0x16   :  { %515 = vmatprep.subr.msk.bf16.mxu0 %vm614_vm1, %v513_v16 }
  0x1d   :  { %518 = vmatpush3.bf16.xpose.msk.msra.mxu0 %vm614_vm1, %v513_v16 }
  0x1e   :  { %521 = vmatprep.subr.msk.bf16.mxu0 %vm614_vm1, %v519_v19 }
  0x25   :  { %524 = vmatpush3.bf16.xpose.msk.msra.mxu0 %vm614_vm1, %v519_v19 }
  0x26   :  { %527 = vmatprep.subr.msk.bf16.mxu0 %vm614_vm1, %v525_v22 }
  0x2d   :  { %530 = vmatpush3.bf16.xpose.msk.msra.mxu0 %vm614_vm1, %v525_v22 }
  0x2e   :  { %533 = vmatprep.subr.msk.bf16.mxu0 %vm614_vm1, %v531_v25 }
  0x35   :  { %536 = vmatpush3.bf16.xpose.msk.msra.mxu0 %vm614_vm1, %v531_v25 }
  0x36   :  { %539 = vmatprep.subr.msk.bf16.mxu0 %vm614_vm1, %v537_v28 }
  0x3d   :  { %542 = vmatpush3.bf16.xpose.msk.msra.mxu0 %vm614_vm1, %v537_v28 }
  0x44   :  { %481 = vmatmul.mubr.msk.f32.vlgmr.msra.gmra.mrb[0].mxu0 %vm45_vm0, %v32_v29 }
  0x84   :  { %v38_v34 = vpop.permute.xlu0 %37 }
  0x88   :  { %v43_v35 = vpop.permute.xlu0 %42  ;;  %v182_v44 = vpop.permute.xlu1 %181 }
  0x8c   :  { %v264_v50 = vpop.permute.xlu1 %263 }
 0x117   :  { %v482_v36 = vpop.f32.mrb[0].mxu0 }
 0x118   :  { %v172_v37 = vadd.f32 %v482_v36, %v43_v35  ;;  %v166_v38 = vpop.f32.mrb[1].mxu0 }
 0x119   :  { %v167_v39 = vadd.f32 %v166_v38, %v38_v34 }
 0x11a   :  { %v176_v40 = vmax.f32 %v172_v37, 0.0 }
 0x11b   :  { %v175_v41 = vmax.f32 %v167_v39, 0.0 }
 0x11d   :  { %v544_v42 = vpack.c.bf16 %v176_v40, %v175_v41 }
 0x11f   :  { %545 = vmatpush3.bf16.msra.mxu1 %v544_v42 }
 0x120   :  { %490 = vmatprep.subr.mxu1 %v582_v31 }
 0x122   :  { %488 = vmatmul.mubr.msk.f32.vlgmr.msra.gmra.mrb[0].mxu1 %vm184_vm3, %v177_v43 }
 0x123   :  { %492 = vmatprep.mubr.msk.f32.mxu1 %vm581_vm2, %v582_v31 }
 0x1f5   :  { %v254_v45 = vpop.f32.mrb[0].mxu1 }
 0x1f6   :  { %v255_v46 = vadd.f32 %v254_v45, %v182_v44  ;;  %v489_v47 = vpop.f32.mrb[1].mxu1 }
 0x1f8   :  { %v258_v48 = vmax.f32 %v255_v46, 0.0 }
 0x1fa   :  { %491 = vmatpush3.msra.mxu1 %v258_v48 }
 0x1fb   :  { %493 = vmatmul.mubr.msk.f32.vlgmr.msra.gmra.mrb[2].mxu1 %vm266_vm4, %v259_v49 }
 0x2ce   :  { %v336_v51 = vpop.f32.mrb[2].mxu1 }
 0x2cf   :  { %v337_v52 = vadd.f32 %v336_v51, %v264_v50  ;;  %v494_v53 = vpop.f32.mrb[3].mxu1 }
 0x2d1   :  { %340 = vxpose.xlu0.b32.start.end [1/1] (short) %v337_v52, 128 }
 0x351   :  { %v356_v54 = vpop.trf.xlu0 }
 0x352   :  { %373 = vst.msk [vmem:[#allocation2] sm:$0xff] %vm372_vm5, %v356_v54 }
 0x355   :  { %v357_v55 = vpop.trf.xlu0 }
 0x356   :  { %374 = vst.msk [vmem:[#allocation2 + $0x8] sm:$0xff] %vm372_vm5, %v357_v55 }
 0x359   :  { %v358_v56 = vpop.trf.xlu0 }
 0x35a   :  { %375 = vst.msk [vmem:[#allocation2 + $0x10] sm:$0xff] %vm372_vm5, %v358_v56 }
 0x35d   :  { %v359_v57 = vpop.trf.xlu0 }
 0x35e   :  { %376 = vst.msk [vmem:[#allocation2 + $0x18] sm:$0xff] %vm372_vm5, %v359_v57 }
 0x361   :  { %v360_v58 = vpop.trf.xlu0 }
 0x362   :  { %377 = vst.msk [vmem:[#allocation2 + $0x20] sm:$0xff] %vm372_vm5, %v360_v58 }
 0x365   :  { %v361_v59 = vpop.trf.xlu0 }
 0x366   :  { %378 = vst.msk [vmem:[#allocation2 + $0x28] sm:$0xff] %vm372_vm5, %v361_v59 }
 0x369   :  { %v362_v60 = vpop.trf.xlu0 }
 0x36a   :  { %379 = vst.msk [vmem:[#allocation2 + $0x30] sm:$0xff] %vm372_vm5, %v362_v60 }
 0x36d   :  { %v363_v61 = vpop.trf.xlu0 }
 0x36e   :  { %380 = vst.msk [vmem:[#allocation2 + $0x38] sm:$0xff] %vm372_vm5, %v363_v61 }
 0x371   :  { %v364_v62 = vpop.trf.xlu0 }
 0x372   :  { %381 = vst.msk [vmem:[#allocation2 + $0x40] sm:$0xff] %vm372_vm5, %v364_v62 }
 0x375   :  { %v365_v63 = vpop.trf.xlu0 }
 0x376   :  { %382 = vst.msk [vmem:[#allocation2 + $0x48] sm:$0xff] %vm372_vm5, %v365_v63 }
 0x379   :  { %v366_v0 = vpop.trf.xlu0 }
 0x37a   :  { %383 = vst.msk [vmem:[#allocation2 + $0x50] sm:$0xff] %vm372_vm5, %v366_v0 }
 0x37d   :  { %v367_v1 = vpop.trf.xlu0 }
 0x37e   :  { %384 = vst.msk [vmem:[#allocation2 + $0x58] sm:$0xff] %vm372_vm5, %v367_v1 }
 0x381   :  { %v368_v2 = vpop.trf.xlu0 }
 0x382   :  { %385 = vst.msk [vmem:[#allocation2 + $0x60] sm:$0xff] %vm372_vm5, %v368_v2 }
 0x385   :  { %v369_v3 = vpop.trf.xlu0 }
 0x386   :  { %386 = vst.msk [vmem:[#allocation2 + $0x68] sm:$0xff] %vm372_vm5, %v369_v3 }
 0x389   :  { %v370_v4 = vpop.trf.xlu0 }
 0x38a   :  { %387 = vst.msk [vmem:[#allocation2 + $0x70] sm:$0xff] %vm372_vm5, %v370_v4 }
 0x38d   :  { %v371_v5 = vpop.trf.xlu0 }
 0x38e   :  { %388 = vst.msk [vmem:[#allocation2 + $0x78] sm:$0xff] %vm372_vm5, %v371_v5 }
 0x38f   :  { %393 = vsyncadd [#allocation3], 2016  ;;  %s583_s1 = smov [#allocation2]  }
 0x390   :  { %s394_s4 = sshll.u32 %s583_s1, 4  ;;  %s395_s4 = int_to_ptr.vmem [resolvable:$true] %s394_s4 }
 0x391   :  { %s555_s5 = scalar_lea.vmem %s395_s4, 32  ;;  %s559_s6 = scalar_lea.vmem %s395_s4, 2048 }
 0x392   :  { %p556_p0 = scmp.ne.s32.totalorder %s395_s4, %s555_s5  ;;  %p560_p1 = scmp.lt.s32.totalorder %s395_s4, %s395_s4 }
 0x393   :  { %p561_p2 = scmp.lt.s32.totalorder %s559_s6, %s555_s5 }
 0x395   :  { %p562_p3 = por %p561_p2, %p560_p1 }
 0x397   :  { %p563_p4 = pnand %p562_p3, %p556_p0 }
 0x399   :  { %566 = shalt.err (!%p563_p4)
}
 0x39a   :  { %s567_s9 = scalar_lea.hbm %s751_s3, 32 }
 0x39b   :  { %p568_p5 = scmp.ne.s32.totalorder %s751_s3, %s567_s9  ;;  %p571_p6 = scmp.lt.u32.totalorder %s567_s9, %s751_s3 }
 0x39d   :  { %p573_p7 = pnand %p571_p6, %p568_p5 }
 0x39f   :  { %576 = shalt.err (!%p573_p7)
}
 0x3a0   :  { %s584_s14 = smov 32   ;;  %s585_s15 = smov 2  }
 0x3a1   :  { %400 = dma.vmem_to_hbm [thread:$0]  %s395_s4, 32, %s751_s3, [#allocation3], %s584_s14, %s584_s14, %s585_s15  }
 0x3a2   :  { %577 = dma.done.wait [#allocation3], 2048  }
 0x3a3   :  { %578 = vsyncadd [#allocation3], 4294965248 }
 0x3a4   :  { %404 = vsyncpa [#allocation3], 1 }

</bundles_post_ra>
